<compile_context>
chip_gen: v7x
topology: tpu7x:2x2x1
jax: 0.10.0
libtpu: 0.0.40
codegen_flags: <defaults>
</compile_context>

<pallas_src>
import math

import jax
import jax.numpy as jnp
from jax.experimental import pallas as pl
from jax.experimental.pallas import tpu as pltpu

_LANE = 128
_SUBLANE = 8


def _round_up(x: int, m: int) -> int:
    return ((x + m - 1) // m) * m


# --------------------------------- kernels --------------------------------- #

def _rain_head_small_kernel(x_ref, w_ref, b_ref, o_ref):
    """out[m] = x[m, :] @ w + b, written lane-dense.

    x_ref: (TM, F)  w_ref: (F, 1)  b_ref: (1, 1)  o_ref: (1, 1, TM).
    The F-reduction runs on the MXU so the mem-bound kernel leaves VPU/XLU
    slots free for the output relayout.
    """
    tm = o_ref.shape[-1]
    w = w_ref[...].astype(jnp.float32)                       # tiny; f32 MXU path
    col = jnp.dot(x_ref[...], w, preferred_element_type=jnp.float32)
    col = col + b_ref[...]                                   # (TM, 1)
    # Relayout the per-row column to a lane-major row -> unmasked full-lane vst.
    o_ref[...] = col.reshape(1, 1, tm).astype(o_ref.dtype)


def _rain_head_large_kernel(x_ref, w1_ref, b1_ref, w2_ref, b2_ref,
                            w3_ref, b3_ref, o_ref):
    """relu(x@W1+b1) -> relu(.@W2+b2) -> .@W3+b3, f32 MXU accumulation.

    Matmul inputs use the weights' dtype (f32 or bf16); bias/ReLU math stays
    in f32 (accumulation precision; v5e's VPU has no bf16 arithmetic).
    """
    tm = o_ref.shape[-1]
    cdt = w1_ref.dtype
    x = x_ref[...].astype(cdt)
    h = jnp.dot(x, w1_ref[...], preferred_element_type=jnp.float32)
    h = jnp.maximum(h + b1_ref[...], 0.0)
    h = jnp.dot(h.astype(cdt), w2_ref[...], preferred_element_type=jnp.float32)
    h = jnp.maximum(h + b2_ref[...], 0.0)
    col = jnp.dot(h.astype(cdt), w3_ref[...],
                  preferred_element_type=jnp.float32) + b3_ref[...]   # (TM, 1)
    o_ref[...] = col.reshape(1, 1, tm).astype(o_ref.dtype)


# ------------------------------ tiling / VMEM ------------------------------ #

def _vmem_capacity_bytes() -> int:
    try:
        return int(pltpu.get_tpu_info().vmem_capacity_bytes)
    except Exception:
        return 64 << 20            # conservative fallback (v7x per-core VMEM)


def _plan(m: int, nf: int, fully_size: str, w_itemsize: int):
    """Pick row tile TM and a vmem_limit from a generation-aware VMEM budget."""
    cap = _vmem_capacity_bytes()
    # Headroom for compiler-internal scratch: ~100 MiB usable on v5e/v6e
    # (128 MiB physical VMEM), ~36 MiB on v7x (64 MiB per TensorCore).
    budget = max(cap - (28 << 20), cap // 2)
    nf_l = _round_up(nf, _LANE)              # lane padding of the minor dim
    nf_s = _round_up(nf, _SUBLANE)
    x_row = nf_l * 4                         # f32 bytes per x row in VMEM
    out_row = 2 * _SUBLANE * 4               # (1,1,TM) out block, 2 buffers

    if fully_size == "small":
        resident1 = nf_s * _LANE * w_itemsize + _SUBLANE * _LANE * 4
        per_row = 2 * x_row + out_row
    else:
        resident1 = (2 * nf_s * nf_l * w_itemsize      # w1, w2
                     + nf_s * _LANE * w_itemsize       # w3 (F, 1)
                     + 2 * _SUBLANE * nf_l * 4         # b1, b2
                     + _SUBLANE * _LANE * 4)           # b3
        if resident1 > budget - (8 << 20):
            # TODO(synk): add a hidden-dim split grid axis (stream W1 column
            # blocks / W2 row blocks with an f32 VMEM accumulator and pl.when
            # init/finalize) instead of requiring full weight residency.
            raise ValueError(
                f"RainHeadGeneric 'large': F={nf} weights "
                f"({resident1 / 2**20:.1f} MiB) exceed the VMEM budget "
                f"({budget / 2**20:.1f} MiB) on this TPU; pre-cast params to "
                f"bfloat16 (cast_params) or reduce F.")
        # x (2 bufs) + ~3 live f32 (TM,F) intermediates + 1 cast copy + out row
        per_row = 2 * x_row + 3 * nf_l * 4 + nf_l * w_itemsize + out_row

    resident = 2 * resident1                 # assume double-buffered (fallback)
    avail = max(budget - resident, 4 << 20)
    # Target an 8-16 MiB x block so the ~0.35us per-step overhead is <5%.
    x_target = (8 << 20) if cap <= (64 << 20) else (16 << 20)
    tm = max(min(x_target // x_row, avail // per_row), _LANE)
    tm -= tm % (512 if tm >= 1024 else (256 if tm >= 512 else _LANE))
    need = per_row * tm + resident + (4 << 20)
    vmem_limit = int(min(max(need, 32 << 20), cap - (4 << 20)))
    return int(tm), vmem_limit


# --------------------------------- wrapper --------------------------------- #

def rain_head_generic(x, params, fully_size: str, *, tm=None):
    """RainHeadGeneric.forward: x [N_b, N_s, N_f] float32 -> [N_b, N_s, 1].

    The matmul compute dtype is taken from the weight dtype in `params`
    (pre-cast once with cast_params(params, jnp.bfloat16) for the fast bf16
    MXU path; the per-call wrapper never casts weights itself).
    """
    nb, ns, nf = x.shape
    m = nb * ns

    wkey = "w" if fully_size == "small" else "w1"
    w_itemsize = jnp.dtype(params[wkey].dtype).itemsize
    tm_auto, vmem_limit = _plan(m, nf, fully_size, w_itemsize)
    tm = tm_auto if tm is None else tm
    tm = min(tm, _round_up(m, _LANE))        # single tile for small problems
    num_tiles = pl.cdiv(m, tm)

    x2d = x.reshape(m, nf)                   # no-copy reshape
    if m < tm:
        # Degenerate single-small-tile case only: pad the tail rows (<= one
        # tiny tile of traffic).  Multi-tile inputs stream unpadded; the ragged
        # last tile is a partial block whose rows >= m are sliced off below.
        x2d = jnp.pad(x2d, ((0, tm - m), (0, 0)))

    x_spec = pl.BlockSpec((tm, nf), lambda i: (i, 0))
    out_spec = pl.BlockSpec((1, 1, tm), lambda i: (i, 0, 0))
    out_shape = jax.ShapeDtypeStruct((num_tiles, 1, tm), x.dtype)

    # TODO(synk): on v7x confirm ("parallel",) shards the row grid across both
    # TensorCores; if not, switch to pltpu.CORE_PARALLEL / pl.core_map.
    compiler_params = pltpu.CompilerParams(
        dimension_semantics=("parallel",), vmem_limit_bytes=vmem_limit)

    if fully_size == "small":
        resident_shapes = [(nf, 1), (1, 1)]
        operands = (x2d, params["w"], params["b"])
        kernel = _rain_head_small_kernel
        cost = pl.CostEstimate(flops=2 * m * nf, transcendentals=0,
                               bytes_accessed=m * nf * 4 + (nf + 1) * 4 + m * 4)
    else:
        resident_shapes = [(nf, nf), (1, nf), (nf, nf), (1, nf), (nf, 1), (1, 1)]
        operands = (x2d, params["w1"], params["b1"], params["w2"], params["b2"],
                    params["w3"], params["b3"])
        kernel = _rain_head_large_kernel
        cost = pl.CostEstimate(
            flops=m * (4 * nf * nf + 2 * nf), transcendentals=0,
            bytes_accessed=(m * nf * 4 + (2 * nf * nf + nf) * w_itemsize
                            + (2 * nf + 1) * 4 + m * 4))

    def build(weight_pipeline_mode):
        if weight_pipeline_mode is None:
            res_specs = [pl.BlockSpec(s, lambda i: (0, 0))
                         for s in resident_shapes]
        else:
            res_specs = [pl.BlockSpec(s, lambda i: (0, 0),
                                      pipeline_mode=weight_pipeline_mode)
                         for s in resident_shapes]
        return pl.pallas_call(
            kernel,
            grid=(num_tiles,),
            in_specs=[x_spec] + res_specs,
            out_specs=out_spec,
            out_shape=out_shape,
            compiler_params=compiler_params,
            cost_estimate=cost,
        )(*operands)

    try:
        # Grid-invariant weights/biases: a single pipeline buffer halves their
        # resident VMEM (constant index_map already avoids re-DMA).
        out3 = build(pl.Buffered(1))
    except Exception:
        out3 = build(None)   # pipeline_mode unsupported -> default 2 buffers

    # Rows >= m of the output slab are garbage (ragged tail) and never alias
    # valid output; slice them off and restore the [N_b, N_s, 1] shape.
    return out3.reshape(num_tiles * tm)[:m].reshape(nb, ns, 1)


# --------------------- deterministic parameter handling --------------------- #

def _linear_init(key, in_features, out_features):
    """torch.nn.Linear default init: U(-1/sqrt(fan_in), +1/sqrt(fan_in)).
    Returns W as (in_features, out_features) and b as (1, out_features)."""
    kw, kb = jax.random.split(key)
    bound = 1.0 / math.sqrt(in_features)
    w = jax.random.uniform(kw, (in_features, out_features), jnp.float32,
                           minval=-bound, maxval=bound)
    b = jax.random.uniform(kb, (1, out_features), jnp.float32,
                           minval=-bound, maxval=bound)
    return w, b


def make_params(key, input_size: int, fully_size: str):
    if fully_size == "small":
        w, b = _linear_init(key, input_size, 1)
        return {"w": w, "b": b}                  # w: (F, 1), b: (1, 1)
    k1, k2, k3 = jax.random.split(key, 3)
    w1, b1 = _linear_init(k1, input_size, input_size)
    w2, b2 = _linear_init(k2, input_size, input_size)
    w3, b3 = _linear_init(k3, input_size, 1)
    return {"w1": w1, "b1": b1, "w2": w2, "b2": b2, "w3": w3, "b3": b3}


def cast_params(params, dtype):
    """Pre-cast weight matrices once (hoists the astype out of the per-call
    wrapper); biases stay f32 for accumulation-precision adds."""
    out = dict(params)
    for k in ("w", "w1", "w2", "w3"):
        if k in out:
            out[k] = out[k].astype(dtype)
    return out


# --------------------------------- reference -------------------------------- #

def rain_head_reference(x, params, fully_size: str):
    hp = jax.lax.Precision.HIGHEST
    if fully_size == "small":
        return jnp.matmul(x, params["w"], precision=hp) + params["b"]
    h = jnp.maximum(jnp.matmul(x, params["w1"], precision=hp) + params["b1"], 0.0)
    h = jnp.maximum(jnp.matmul(h, params["w2"], precision=hp) + params["b2"], 0.0)
    return jnp.matmul(h, params["w3"], precision=hp) + params["b3"]


# ----------------------------------- main ----------------------------------- #

if __name__ == "__main__":
    key = jax.random.PRNGKey(0)
    k_x, k_small, k_large = jax.random.split(key, 3)

    n_b, n_s, n_f = 2, 8, 32   # batch, seq, features (input_size = n_f)
    x = jax.random.normal(k_x, (n_b, n_s, n_f), dtype=jnp.float32)

    # f32 weights: tight check against the f32 (HIGHEST precision) reference.
    for fully_size, k in (("small", k_small), ("large", k_large)):
        params = make_params(k, n_f, fully_size)
        out = jax.block_until_ready(rain_head_generic(x, params, fully_size))
        ref = rain_head_reference(x, params, fully_size)
        assert out.shape == (n_b, n_s, 1), out.shape
        err = float(jnp.max(jnp.abs(out - ref)))
        assert jnp.allclose(out, ref, atol=1e-4, rtol=1e-4), (fully_size, err)

    # Recommended fast path for 'large': bf16 weights (pre-cast once), f32 MXU
    # accumulation.  Looser tolerance vs. the f32 reference is the documented
    # accuracy/perf trade-off.
    params_f32 = make_params(k_large, n_f, "large")
    params_bf16 = cast_params(params_f32, jnp.bfloat16)
    out_bf16 = jax.block_until_ready(rain_head_generic(x, params_bf16, "large"))
    ref = rain_head_reference(x, params_f32, "large")
    err = float(jnp.max(jnp.abs(out_bf16 - ref)))
    assert jnp.allclose(out_bf16, ref, atol=5e-2, rtol=5e-2), err

    print("KERNEL_OK")
</pallas_src>

<mosaic_0001>
module attributes {stable_mosaic.version = 11 : i64} {
  func.func @_rain_head_small_kernel(%arg0: i32, %arg1: memref<128x32xf32, #tpu.memory_space<vmem>>, %arg2: memref<32x1xf32, #tpu.memory_space<vmem>>, %arg3: memref<1x1xf32, #tpu.memory_space<vmem>>, %arg4: memref<1x1x128xf32, #tpu.memory_space<vmem>>) attributes {dimension_semantics = [#tpu.dimension_semantics<parallel>], iteration_bounds = array<i64: 1>, scalar_prefetch = 0 : i64, scratch_operands = 0 : i64, tpu.core_type = #tpu.core_type<tc>, window_params = [{transform_indices = @transform_0, window_bounds = array<i64: 128, 32>}, {pipeline_mode = #tpu.pipeline_mode<synchronous>, transform_indices = @transform_1, window_bounds = array<i64: 32, 1>}, {pipeline_mode = #tpu.pipeline_mode<synchronous>, transform_indices = @transform_2, window_bounds = array<i64: 1, 1>}, {transform_indices = @transform_3, window_bounds = array<i64: 1, 1, 128>}]} {
    %c0 = arith.constant 0 : index
    %c0_0 = arith.constant 0 : index
    %0 = vector.load %arg2[%c0, %c0_0] : memref<32x1xf32, #tpu.memory_space<vmem>>, vector<32x1xf32>
    %c0_1 = arith.constant 0 : index
    %c0_2 = arith.constant 0 : index
    %1 = vector.load %arg1[%c0_1, %c0_2] : memref<128x32xf32, #tpu.memory_space<vmem>>, vector<128x32xf32>
    %cst = arith.constant dense<0.000000e+00> : vector<128x1xf32>
    %2 = tpu.matmul %1, %0, %cst {dimension_numbers = #tpu.dot_dimension_numbers<[1], [0], [0], [1], [0, 0, 1, 1], [], []>} : vector<128x32xf32>, vector<32x1xf32>, vector<128x1xf32> -> vector<128x1xf32>
    %c0_3 = arith.constant 0 : index
    %c0_4 = arith.constant 0 : index
    %3 = vector.load %arg3[%c0_3, %c0_4] : memref<1x1xf32, #tpu.memory_space<vmem>>, vector<1x1xf32>
    %4 = vector.broadcast %3 : vector<1x1xf32> to vector<128x1xf32>
    %5 = arith.addf %2, %4 : vector<128x1xf32>
    %6 = vector.shape_cast %5 : vector<128x1xf32> to vector<1x1x128xf32>
    %c0_5 = arith.constant 0 : index
    %c0_6 = arith.constant 0 : index
    %c0_7 = arith.constant 0 : index
    %7 = vector.load %arg4[%c0_5, %c0_6, %c0_7] : memref<1x1x128xf32, #tpu.memory_space<vmem>>, vector<1x1x128xf32>
    tpu.vector_store %arg4[%c0_5, %c0_6, %c0_7], %6 {strides = array<i32>} : memref<1x1x128xf32, #tpu.memory_space<vmem>>, vector<1x1x128xf32>,
    return
  }
  func.func @transform_0(%arg0: i32) -> (i32, i32) {
    %c0_i32 = arith.constant 0 : i32
    %c0_i32_0 = arith.constant 0 : i32
    return %arg0, %c0_i32 : i32, i32
  }
  func.func @transform_1(%arg0: i32) -> (i32, i32) {
    %c0_i32 = arith.constant 0 : i32
    %c0_i32_0 = arith.constant 0 : i32
    %c0_i32_1 = arith.constant 0 : i32
    return %c0_i32, %c0_i32_0 : i32, i32
  }
  func.func @transform_2(%arg0: i32) -> (i32, i32) {
    %c0_i32 = arith.constant 0 : i32
    %c0_i32_0 = arith.constant 0 : i32
    %c0_i32_1 = arith.constant 0 : i32
    return %c0_i32, %c0_i32_0 : i32, i32
  }
  func.func @transform_3(%arg0: i32) -> (i32, i32, i32) {
    %c0_i32 = arith.constant 0 : i32
    %c0_i32_0 = arith.constant 0 : i32
    %c0_i32_1 = arith.constant 0 : i32
    return %arg0, %c0_i32, %c0_i32_0 : i32, i32, i32
  }
}

module attributes {stable_mosaic.version = 11 : i64} {
  func.func @_rain_head_small_kernel(%arg0: i32, %arg1: memref<128x32xf32, #tpu.memory_space<vmem>>, %arg2: memref<32x1xf32, #tpu.memory_space<vmem>>, %arg3: memref<1x1xf32, #tpu.memory_space<vmem>>, %arg4: memref<1x1x128xf32, #tpu.memory_space<vmem>>) attributes {dimension_semantics = [#tpu.dimension_semantics<parallel>], iteration_bounds = array<i64: 1>, scalar_prefetch = 0 : i64, scratch_operands = 0 : i64, tpu.core_type = #tpu.core_type<tc>, window_params = [{transform_indices = @transform_0, window_bounds = array<i64: 128, 32>}, {pipeline_mode = #tpu.pipeline_mode<synchronous>, transform_indices = @transform_1, window_bounds = array<i64: 32, 1>}, {pipeline_mode = #tpu.pipeline_mode<synchronous>, transform_indices = @transform_2, window_bounds = array<i64: 1, 1>}, {transform_indices = @transform_3, window_bounds = array<i64: 1, 1, 128>}]} {
    %c0 = arith.constant 0 : index
    %c0_0 = arith.constant 0 : index
    %0 = vector.load %arg2[%c0, %c0_0] : memref<32x1xf32, #tpu.memory_space<vmem>>, vector<32x1xf32>
    %c0_1 = arith.constant 0 : index
    %c0_2 = arith.constant 0 : index
    %1 = vector.load %arg1[%c0_1, %c0_2] : memref<128x32xf32, #tpu.memory_space<vmem>>, vector<128x32xf32>
    %cst = arith.constant dense<0.000000e+00> : vector<128x1xf32>
    %2 = tpu.matmul %1, %0, %cst {dimension_numbers = #tpu.dot_dimension_numbers<[1], [0], [0], [1], [0, 0, 1, 1], [], []>} : vector<128x32xf32>, vector<32x1xf32>, vector<128x1xf32> -> vector<128x1xf32>
    %c0_3 = arith.constant 0 : index
    %c0_4 = arith.constant 0 : index
    %3 = vector.load %arg3[%c0_3, %c0_4] : memref<1x1xf32, #tpu.memory_space<vmem>>, vector<1x1xf32>
    %4 = vector.broadcast %3 : vector<1x1xf32> to vector<128x1xf32>
    %5 = arith.addf %2, %4 : vector<128x1xf32>
    %6 = vector.shape_cast %5 : vector<128x1xf32> to vector<1x1x128xf32>
    %c0_5 = arith.constant 0 : index
    %c0_6 = arith.constant 0 : index
    %c0_7 = arith.constant 0 : index
    %7 = vector.load %arg4[%c0_5, %c0_6, %c0_7] : memref<1x1x128xf32, #tpu.memory_space<vmem>>, vector<1x1x128xf32>
    tpu.vector_store %arg4[%c0_5, %c0_6, %c0_7], %6 {strides = array<i32>} : memref<1x1x128xf32, #tpu.memory_space<vmem>>, vector<1x1x128xf32>,
    return
  }
  func.func @transform_0(%arg0: i32) -> (i32, i32) {
    %c0_i32 = arith.constant 0 : i32
    %c0_i32_0 = arith.constant 0 : i32
    return %arg0, %c0_i32 : i32, i32
  }
  func.func @transform_1(%arg0: i32) -> (i32, i32) {
    %c0_i32 = arith.constant 0 : i32
    %c0_i32_0 = arith.constant 0 : i32
    %c0_i32_1 = arith.constant 0 : i32
    return %c0_i32, %c0_i32_0 : i32, i32
  }
  func.func @transform_2(%arg0: i32) -> (i32, i32) {
    %c0_i32 = arith.constant 0 : i32
    %c0_i32_0 = arith.constant 0 : i32
    %c0_i32_1 = arith.constant 0 : i32
    return %c0_i32, %c0_i32_0 : i32, i32
  }
  func.func @transform_3(%arg0: i32) -> (i32, i32, i32) {
    %c0_i32 = arith.constant 0 : i32
    %c0_i32_0 = arith.constant 0 : i32
    %c0_i32_1 = arith.constant 0 : i32
    return %arg0, %c0_i32, %c0_i32_0 : i32, i32, i32
  }
}

</mosaic_0001>

<bundles_post_ra>
// kernel: tpu_custom_call.1
= control target key start
LH: loop header
LB: loop body
LE: loop exit
PB: predicated region body
PF: predicated region fallthrough
CT: control target
= control target key end

     0   :  { %s675_s0 = inlined_call_operand.vmem [shape: f32[128,32], index: 0, kind: input, shape index: {}]   ;;  %s676_s1 = inlined_call_operand.vmem [shape: f32[32,1], index: 1, kind: input, shape index: {}]   ;;  %s677_s2 = inlined_call_operand.<no memory space> [shape: f32[1,1], index: 2, kind: input, shape index: {}]   ;;  %s678_s3 = inlined_call_operand.hbm [shape: f32[1,1,128], index: 3, kind: output, shape index: {}]  }
   0x1   :  { %v8_v0 = vstv %s677_s2 }
   0x2   :  { %9 = vst [vmem:[#allocation2] sm:$0x1] %v8_v0 }
   0x3   :  { %v17_v1 = vld [vmem:[%s676_s1] sm:$0xff]  ;;  %v18_v2 = vld [vmem:[%s676_s1 + $0x8] sm:$0xff]  ;;  %v19_v3 = vld [vmem:[%s676_s1 + $0x10] sm:$0xff]  ;;  %vm44_vm0 = vcmask 261120  }
   0x4   :  { %v498_v4 = vpack.c.bf16 %v18_v2, %v17_v1  ;;  %v20_v5 = vld [vmem:[%s676_s1 + $0x18] sm:$0xff]  ;;  %v21_v6 = vld [vmem:[%s675_s0] sm:$0xff] }
   0x5   :  { %v29_v7 = vld [vmem:[%s675_s0 + $0x40] sm:$0xff]  ;;  %v502_v8 = vpack.c.bf16 %v20_v5, %v19_v3  ;;  %474 = vmatprep.mubr.msk.f32.mxu0 %vm44_vm0, %v21_v6 }
   0x6   :  { %486 = vmatprep.mubr.msk.f32.mxu1 %vm44_vm0, %v29_v7  ;;  %499 = vmatprep.subr.bf16.mxu0 %v498_v4 }
   0x7   :  { %506 = vmatprep.subr.bf16.mxu1 %v498_v4  ;;  %501 = vmatpush3.bf16.msra.mxu0 %v498_v4 }
   0x8   :  { %508 = vmatpush3.bf16.msra.mxu1 %v498_v4  ;;  %503 = vmatprep.subr.bf16.mxu0 %v502_v8 }
   0x9   :  { %507 = vmatprep.subr.bf16.mxu1 %v502_v8 }
   0xa   :  { %10 = vsyncpa [#allocation4], 0  ;;  %v22_v9 = vld [vmem:[%s675_s0 + $0x8] sm:$0xff]  ;;  %v23_v11 = vld [vmem:[%s675_s0 + $0x10] sm:$0xff]  ;;  %v538_v23 = vmov 0   ;;  %v302_v57 = vlaneseq  ;;  %vm313_vm1 = vcmask 130112  }
   0xb   :  { %505 = vmatpush3.bf16.msra.mxu0 %v502_v8  ;;  %v30_v10 = vld [vmem:[%s675_s0 + $0x48] sm:$0xff]  ;;  %v31_v12 = vld [vmem:[%s675_s0 + $0x50] sm:$0xff]  ;;  %v24_v13 = vld [vmem:[%s675_s0 + $0x18] sm:$0xff]  ;;  %513 = vset.pattern.permute.xlu1 %v538_v23  ;;  %vm320_vm2 = vcmask 195712   ;;  %vm327_vm3 = vcmask 261312   ;;  %vm334_vm4 = vcmask 326912  }
   0xc   :  { %509 = vmatpush3.bf16.msra.mxu1 %v502_v8  ;;  %v32_v14 = vld [vmem:[%s675_s0 + $0x58] sm:$0xff]  ;;  %v25_v15 = vld [vmem:[%s675_s0 + $0x20] sm:$0xff]  ;;  %v26_v17 = vld [vmem:[%s675_s0 + $0x28] sm:$0xff]  ;;  %512 = vset.pattern.permute.xlu0 %v538_v23  ;;  %v303_v58 = vand.u32 127, %v302_v57  ;;  %v641_v61 = vshrl.u32 %v302_v57, 7  ;;  %vm341_vm5 = vcmask 392512  }
   0xd   :  { %v33_v16 = vld [vmem:[%s675_s0 + $0x60] sm:$0xff]  ;;  %v34_v18 = vld [vmem:[%s675_s0 + $0x68] sm:$0xff]  ;;  %v27_v19 = vld [vmem:[%s675_s0 + $0x30] sm:$0xff]  ;;  %vm348_vm6 = vcmask 458112   ;;  %vm355_vm7 = vcmask 523712   ;;  %vm362_vm8 = vcmask 589312  }
   0xe   :  { %475 = vmatmul.mubr.msk.f32.vlgmr.msra.gmra.mrb[0].mxu0 %vm44_vm0, %v22_v9  ;;  %v35_v20 = vld [vmem:[%s675_s0 + $0x70] sm:$0xff]  ;;  %v28_v21 = vld [vmem:[%s675_s0 + $0x38] sm:$0xff]  ;;  %v429_v24 = vld [vmem:[#allocation2] ss:$0 sm:$0xff]  ;;  %v308_v62 = vadd.s32 4294967288, %v303_v58  ;;  %v315_v1 = vadd.s32 4294967280, %v303_v58  ;;  %v306_v2 = vsub.s32 %v303_v58, %v641_v61 }
   0xf   :  { %487 = vmatmul.mubr.msk.f32.vlgmr.msra.gmra.mrb[0].mxu1 %vm44_vm0, %v30_v10  ;;  %477 = vmatprep.mubr.msk.f32.mxu0 %vm44_vm0, %v23_v11  ;;  %v36_v22 = vld [vmem:[%s675_s0 + $0x78] sm:$0xff]  ;;  %v322_v4 = vadd.s32 4294967272, %v303_v58  ;;  %v329_v8 = vadd.s32 4294967264, %v303_v58  ;;  %v336_v10 = vadd.s32 4294967256, %v303_v58  ;;  %v364_v23 = vadd.s32 4294967224, %v303_v58  ;;  %s539_s0 = smov [#allocation3]  }
  0x10   :  { %489 = vmatprep.mubr.msk.f32.mxu1 %vm44_vm0, %v31_v12  ;;  %v311_v3 = vsub.s32 %v308_v62, %v641_v61  ;;  %v318_v7 = vsub.s32 %v315_v1, %v641_v61  ;;  %vm369_vm9 = vcmask 654912   ;;  %vm376_vm10 = vcmask 720512   ;;  %s421_s24 = sshll.u32 %s539_s0, 4  ;;  %s422_s24 = int_to_ptr.vmem [resolvable:$true] %s421_s24 }
  0x11   :  { %v325_v12 = vsub.s32 %v322_v4, %v641_v61  ;;  %vm383_vm11 = vcmask 786112   ;;  %vm390_vm12 = vcmask 851712   ;;  %vm397_vm13 = vcmask 917312   ;;  %s514_s1 = scalar_lea.vmem %s422_s24, 16  ;;  %s518_s25 = scalar_lea.vmem %s422_s24, 32 }
  0x12   :  { %478 = vmatmul.mubr.msk.f32.gmra.mrb[2].mxu0 %vm44_vm0, %v24_v13  ;;  %vm404_vm14 = vcmask 982912   ;;  %vm411_vm15 = vcmask 1048512   ;;  %p515_p0 = scmp.ne.s32.totalorder %s422_s24, %s514_s1  ;;  %p519_p1 = scmp.lt.s32.totalorder %s422_s24, %s422_s24 }
  0x13   :  { %490 = vmatmul.mubr.msk.f32.gmra.mrb[2].mxu1 %vm44_vm0, %v32_v14  ;;  %480 = vmatprep.mubr.msk.f32.mxu0 %vm44_vm0, %v25_v15  ;;  %p520_p2 = scmp.lt.s32.totalorder %s518_s25, %s514_s1 }
  0x14   :  { %492 = vmatprep.mubr.msk.f32.mxu1 %vm44_vm0, %v33_v16  ;;  %v332_v16 = vsub.s32 %v329_v8, %v641_v61 }
  0x15   :  { %p521_p3 = por %p520_p2, %p519_p1 }
  0x16   :  { %481 = vmatmul.mubr.msk.f32.gmra.mrb[4].mxu0 %vm44_vm0, %v26_v17  ;;  %v350_v17 = vadd.s32 4294967240, %v303_v58 }
  0x17   :  { %493 = vmatmul.mubr.msk.f32.gmra.mrb[4].mxu1 %vm44_vm0, %v34_v18  ;;  %483 = vmatprep.mubr.msk.f32.mxu0 %vm44_vm0, %v27_v19  ;;  %v343_v18 = vadd.s32 4294967248, %v303_v58  ;;  %p522_p4 = pnand %p521_p3, %p515_p0 }
  0x18   :  { %495 = vmatprep.mubr.msk.f32.mxu1 %vm44_vm0, %v35_v20  ;;  %v339_v20 = vsub.s32 %v336_v10, %v641_v61 }
  0x1a   :  { %484 = vmatmul.mubr.msk.f32.gmra.mrb[6].mxu0 %vm44_vm0, %v28_v21  ;;  %v357_v21 = vadd.s32 4294967232, %v303_v58 }
  0x1b   :  { %496 = vmatmul.mubr.msk.f32.gmra.mrb[6].mxu1 %vm44_vm0, %v36_v22 }
  0xe1   :  { %v476_v25 = vpop.f32.mrb[0].mxu0 }
  0xe2   :  { %v488_v26 = vpop.f32.mrb[0].mxu1  ;;  %v165_v27 = vadd.f32 %v476_v25, %v429_v24  ;;  %v159_v29 = vpop.f32.mrb[1].mxu0  ;;  %v371_v25 = vadd.s32 4294967216, %v303_v58 }
  0xe3   :  { %v205_v28 = vadd.f32 %v488_v26, %v429_v24  ;;  %v199_v30 = vpop.f32.mrb[1].mxu1  ;;  %v160_v33 = vadd.f32 %v429_v24, %v159_v29  ;;  %v353_v29 = vsub.s32 %v350_v17, %v641_v61 }
  0xe4   :  { %258 = vperm.xlu0 %512, %v165_v27   ;;  %v200_v40 = vadd.f32 %v429_v24, %v199_v30  ;;  %v346_v30 = vsub.s32 %v343_v18, %v641_v61 }
  0xe5   :  { %282 = vperm.xlu1 %513, %v205_v28   ;;  %v479_v31 = vpop.f32.mrb[2].mxu0 }
  0xe6   :  { %v491_v32 = vpop.f32.mrb[2].mxu1  ;;  %v175_v34 = vadd.f32 %v479_v31, %v429_v24  ;;  %v169_v35 = vpop.f32.mrb[3].mxu0  ;;  %v378_v31 = vadd.s32 4294967208, %v303_v58 }
  0xe7   :  { %v209_v36 = vpop.f32.mrb[3].mxu1  ;;  %v215_v37 = vadd.f32 %v491_v32, %v429_v24  ;;  %v170_v45 = vadd.f32 %v429_v24, %v169_v35  ;;  %v360_v35 = vsub.s32 %v357_v21, %v641_v61 }
  0xe8   :  { %255 = vperm.xlu0 %512, %v160_v33   ;;  %v210_v46 = vadd.f32 %v429_v24, %v209_v36 }
  0xe9   :  { %264 = vperm.xlu1 %513, %v175_v34   ;;  %v482_v38 = vpop.f32.mrb[4].mxu0  ;;  %v392_v34 = vadd.s32 4294967192, %v303_v58 }
  0xea   :  { %v494_v39 = vpop.f32.mrb[4].mxu1  ;;  %v179_v41 = vpop.f32.mrb[5].mxu0  ;;  %v185_v49 = vadd.f32 %v482_v38, %v429_v24  ;;  %v367_v38 = vsub.s32 %v364_v23, %v641_v61 }
  0xeb   :  { %v219_v42 = vpop.f32.mrb[5].mxu1  ;;  %v180_v50 = vadd.f32 %v429_v24, %v179_v41  ;;  %v225_v53 = vadd.f32 %v494_v39, %v429_v24  ;;  %v374_v39 = vsub.s32 %v371_v25, %v641_v61 }
  0xec   :  { %279 = vperm.xlu0 %512, %v200_v40   ;;  %v220_v54 = vadd.f32 %v429_v24, %v219_v42 }
  0xed   :  { %288 = vperm.xlu1 %513, %v215_v37   ;;  %v485_v43 = vpop.f32.mrb[6].mxu0  ;;  %v385_v37 = vadd.s32 4294967200, %v303_v58 }
  0xee   :  { %v497_v44 = vpop.f32.mrb[6].mxu1  ;;  %v189_v47 = vpop.f32.mrb[7].mxu0  ;;  %v195_v51 = vadd.f32 %v485_v43, %v429_v24 }
  0xef   :  { %v229_v48 = vpop.f32.mrb[7].mxu1  ;;  %v190_v52 = vadd.f32 %v429_v24, %v189_v47  ;;  %v235_v55 = vadd.f32 %v497_v44, %v429_v24  ;;  %v406_v44 = vadd.s32 4294967176, %v303_v58 }
  0xf0   :  { %285 = vperm.xlu0 %512, %v210_v46   ;;  %v230_v56 = vadd.f32 %v429_v24, %v229_v48  ;;  %v381_v46 = vsub.s32 %v378_v31, %v641_v61  ;;  %v395_v48 = vsub.s32 %v392_v34, %v641_v61 }
  0xf1   :  { %261 = vperm.xlu1 %513, %v170_v45   ;;  %v399_v45 = vadd.s32 4294967184, %v303_v58  ;;  %v409_v58 = vsub.s32 %v406_v44, %v641_v61 }
  0xf4   :  { %267 = vperm.xlu0 %512, %v180_v50  }
  0xf5   :  { %270 = vperm.xlu1 %513, %v185_v49  }
  0xf8   :  { %273 = vperm.xlu0 %512, %v190_v52  }
  0xf9   :  { %276 = vperm.xlu1 %513, %v195_v51   ;;  %v388_v51 = vsub.s32 %v385_v37, %v641_v61 }
  0xfc   :  { %291 = vperm.xlu0 %512, %v220_v54  }
  0xfd   :  { %294 = vperm.xlu1 %513, %v225_v53  }
 0x100   :  { %297 = vperm.xlu0 %512, %v230_v56  }
 0x101   :  { %300 = vperm.xlu1 %513, %v235_v55  }
 0x163   :  { %v259_v60 = vpop.permute.xlu0 %258 }
 0x164   :  { %v639_v59 = vpop.permute.xlu1 %282  ;;  %v312_v11 = vrot.slane %v259_v60, %v311_v3  ;;  %v402_v60 = vsub.s32 %v399_v45, %v641_v61 }
 0x165   :  { %v368_v52 = vrot.slane %v639_v59, %v367_v38 }
 0x167   :  { %v256_v0 = vpop.permute.xlu0 %255 }
 0x168   :  { %v265_v63 = vpop.permute.xlu1 %264  ;;  %v307_v9 = vrot.slane %v256_v0, %v306_v2 }
 0x169   :  { %v326_v24 = vrot.slane %v265_v63, %v325_v12 }
 0x16a   :  { %v314_v19 = vsel %vm313_vm1, %v312_v11, %v307_v9 }
 0x16b   :  { %v280_v6 = vpop.permute.xlu0 %279 }
 0x16c   :  { %v645_v5 = vpop.permute.xlu1 %288  ;;  %v361_v49 = vrot.slane %v280_v6, %v360_v35 }
 0x16d   :  { %v382_v62 = vrot.slane %v645_v5, %v381_v46 }
 0x16f   :  { %v286_v14 = vpop.permute.xlu0 %285 }
 0x170   :  { %v262_v13 = vpop.permute.xlu1 %261  ;;  %v375_v56 = vrot.slane %v286_v14, %v374_v39 }
 0x171   :  { %v319_v15 = vrot.slane %v262_v13, %v318_v7 }
 0x173   :  { %v321_v22 = vsel %vm320_vm2, %v319_v15, %v314_v19  ;;  %v268_v27 = vpop.permute.xlu0 %267 }
 0x174   :  { %v271_v26 = vpop.permute.xlu1 %270  ;;  %v333_v28 = vrot.slane %v268_v27, %v332_v16  ;;  %v328_v33 = vsel %vm327_vm3, %v326_v24, %v321_v22 }
 0x175   :  { %v340_v32 = vrot.slane %v271_v26, %v339_v20 }
 0x176   :  { %v335_v36 = vsel %vm334_vm4, %v333_v28, %v328_v33 }
 0x177   :  { %v274_v41 = vpop.permute.xlu0 %273  ;;  %v342_v47 = vsel %vm341_vm5, %v340_v32, %v335_v36 }
 0x178   :  { %v277_v40 = vpop.permute.xlu1 %276  ;;  %v347_v43 = vrot.slane %v274_v41, %v346_v30 }
 0x179   :  { %v354_v42 = vrot.slane %v277_v40, %v353_v29 }
 0x17a   :  { %v349_v50 = vsel %vm348_vm6, %v347_v43, %v342_v47 }
 0x17b   :  { %v356_v53 = vsel %vm355_vm7, %v354_v42, %v349_v50  ;;  %v292_v55 = vpop.permute.xlu0 %291 }
 0x17c   :  { %v295_v54 = vpop.permute.xlu1 %294  ;;  %v363_v57 = vsel %vm362_vm8, %v361_v49, %v356_v53  ;;  %v389_v1 = vrot.slane %v292_v55, %v388_v51 }
 0x17d   :  { %v370_v63 = vsel %vm369_vm9, %v368_v52, %v363_v57  ;;  %v396_v2 = vrot.slane %v295_v54, %v395_v48 }
 0x17e   :  { %v377_v0 = vsel %vm376_vm10, %v375_v56, %v370_v63 }
 0x17f   :  { %v384_v59 = vsel %vm383_vm11, %v382_v62, %v377_v0  ;;  %v298_v4 = vpop.permute.xlu0 %297 }
 0x180   :  { %v301_v3 = vpop.permute.xlu1 %300  ;;  %v391_v6 = vsel %vm390_vm12, %v389_v1, %v384_v59  ;;  %v403_v8 = vrot.slane %v298_v4, %v402_v60 }
 0x181   :  { %v410_v7 = vrot.slane %v301_v3, %v409_v58  ;;  %v398_v9 = vsel %vm397_vm13, %v396_v2, %v391_v6 }
 0x182   :  { %v405_v61 = vsel %vm404_vm14, %v403_v8, %v398_v9 }
 0x183   :  { %v412_v5 = vsel %vm411_vm15, %v410_v7, %v405_v61 }
 0x184   :  { %414 = vst [vmem:[#allocation3] sm:$0x1] %v412_v5 }
 0x185   :  { %525 = shalt.err (!%p522_p4)
}
 0x186   :  { %s526_s28 = scalar_lea.hbm %s678_s3, 16 }
 0x187   :  { %p527_p5 = scmp.ne.s32.totalorder %s678_s3, %s526_s28  ;;  %p530_p6 = scmp.lt.u32.totalorder %s526_s28, %s678_s3 }
 0x189   :  { %p532_p7 = pnand %p530_p6, %p527_p5 }
 0x18b   :  { %535 = shalt.err (!%p532_p7)
}
 0x18c   :  { %424 = dma.vmem_to_hbm [thread:$0]  %s422_s24, 16, %s678_s3, [#allocation4]  }
 0x18d   :  { %536 = dma.done.wait [#allocation4], 16  }
 0x18e   :  { %537 = vsyncadd [#allocation4], 4294967280 }
 0x18f   :  { %428 = vsyncpa [#allocation4], 1 }

// kernel: tpu_custom_call.1
= control target key start
LH: loop header
LB: loop body
LE: loop exit
PB: predicated region body
PF: predicated region fallthrough
CT: control target
= control target key end

     0   :  { %s675_s0 = inlined_call_operand.vmem [shape: f32[128,32], index: 0, kind: input, shape index: {}]   ;;  %s676_s1 = inlined_call_operand.vmem [shape: f32[32,1], index: 1, kind: input, shape index: {}]   ;;  %s677_s2 = inlined_call_operand.<no memory space> [shape: f32[1,1], index: 2, kind: input, shape index: {}]   ;;  %s678_s3 = inlined_call_operand.hbm [shape: f32[1,1,128], index: 3, kind: output, shape index: {}]  }
   0x1   :  { %v8_v0 = vstv %s677_s2 }
   0x2   :  { %9 = vst [vmem:[#allocation2] sm:$0x1] %v8_v0 }
   0x3   :  { %v17_v1 = vld [vmem:[%s676_s1] sm:$0xff]  ;;  %v18_v2 = vld [vmem:[%s676_s1 + $0x8] sm:$0xff]  ;;  %v19_v3 = vld [vmem:[%s676_s1 + $0x10] sm:$0xff]  ;;  %vm44_vm0 = vcmask 261120  }
   0x4   :  { %v498_v4 = vpack.c.bf16 %v18_v2, %v17_v1  ;;  %v20_v5 = vld [vmem:[%s676_s1 + $0x18] sm:$0xff]  ;;  %v21_v6 = vld [vmem:[%s675_s0] sm:$0xff] }
   0x5   :  { %v29_v7 = vld [vmem:[%s675_s0 + $0x40] sm:$0xff]  ;;  %v502_v8 = vpack.c.bf16 %v20_v5, %v19_v3  ;;  %474 = vmatprep.mubr.msk.f32.mxu0 %vm44_vm0, %v21_v6 }
   0x6   :  { %486 = vmatprep.mubr.msk.f32.mxu1 %vm44_vm0, %v29_v7  ;;  %499 = vmatprep.subr.bf16.mxu0 %v498_v4 }
   0x7   :  { %506 = vmatprep.subr.bf16.mxu1 %v498_v4  ;;  %501 = vmatpush3.bf16.msra.mxu0 %v498_v4 }
   0x8   :  { %508 = vmatpush3.bf16.msra.mxu1 %v498_v4  ;;  %503 = vmatprep.subr.bf16.mxu0 %v502_v8 }
   0x9   :  { %507 = vmatprep.subr.bf16.mxu1 %v502_v8 }
   0xa   :  { %10 = vsyncpa [#allocation4], 0  ;;  %v22_v9 = vld [vmem:[%s675_s0 + $0x8] sm:$0xff]  ;;  %v23_v11 = vld [vmem:[%s675_s0 + $0x10] sm:$0xff]  ;;  %v538_v23 = vmov 0   ;;  %v302_v57 = vlaneseq  ;;  %vm313_vm1 = vcmask 130112  }
   0xb   :  { %505 = vmatpush3.bf16.msra.mxu0 %v502_v8  ;;  %v30_v10 = vld [vmem:[%s675_s0 + $0x48] sm:$0xff]  ;;  %v31_v12 = vld [vmem:[%s675_s0 + $0x50] sm:$0xff]  ;;  %v24_v13 = vld [vmem:[%s675_s0 + $0x18] sm:$0xff]  ;;  %513 = vset.pattern.permute.xlu1 %v538_v23  ;;  %vm320_vm2 = vcmask 195712   ;;  %vm327_vm3 = vcmask 261312   ;;  %vm334_vm4 = vcmask 326912  }
   0xc   :  { %509 = vmatpush3.bf16.msra.mxu1 %v502_v8  ;;  %v32_v14 = vld [vmem:[%s675_s0 + $0x58] sm:$0xff]  ;;  %v25_v15 = vld [vmem:[%s675_s0 + $0x20] sm:$0xff]  ;;  %v26_v17 = vld [vmem:[%s675_s0 + $0x28] sm:$0xff]  ;;  %512 = vset.pattern.permute.xlu0 %v538_v23  ;;  %v303_v58 = vand.u32 127, %v302_v57  ;;  %v641_v61 = vshrl.u32 %v302_v57, 7  ;;  %vm341_vm5 = vcmask 392512  }
   0xd   :  { %v33_v16 = vld [vmem:[%s675_s0 + $0x60] sm:$0xff]  ;;  %v34_v18 = vld [vmem:[%s675_s0 + $0x68] sm:$0xff]  ;;  %v27_v19 = vld [vmem:[%s675_s0 + $0x30] sm:$0xff]  ;;  %vm348_vm6 = vcmask 458112   ;;  %vm355_vm7 = vcmask 523712   ;;  %vm362_vm8 = vcmask 589312  }
   0xe   :  { %475 = vmatmul.mubr.msk.f32.vlgmr.msra.gmra.mrb[0].mxu0 %vm44_vm0, %v22_v9  ;;  %v35_v20 = vld [vmem:[%s675_s0 + $0x70] sm:$0xff]  ;;  %v28_v21 = vld [vmem:[%s675_s0 + $0x38] sm:$0xff]  ;;  %v429_v24 = vld [vmem:[#allocation2] ss:$0 sm:$0xff]  ;;  %v308_v62 = vadd.s32 4294967288, %v303_v58  ;;  %v315_v1 = vadd.s32 4294967280, %v303_v58  ;;  %v306_v2 = vsub.s32 %v303_v58, %v641_v61 }
   0xf   :  { %487 = vmatmul.mubr.msk.f32.vlgmr.msra.gmra.mrb[0].mxu1 %vm44_vm0, %v30_v10  ;;  %477 = vmatprep.mubr.msk.f32.mxu0 %vm44_vm0, %v23_v11  ;;  %v36_v22 = vld [vmem:[%s675_s0 + $0x78] sm:$0xff]  ;;  %v322_v4 = vadd.s32 4294967272, %v303_v58  ;;  %v329_v8 = vadd.s32 4294967264, %v303_v58  ;;  %v336_v10 = vadd.s32 4294967256, %v303_v58  ;;  %v364_v23 = vadd.s32 4294967224, %v303_v58  ;;  %s539_s0 = smov [#allocation3]  }
  0x10   :  { %489 = vmatprep.mubr.msk.f32.mxu1 %vm44_vm0, %v31_v12  ;;  %v311_v3 = vsub.s32 %v308_v62, %v641_v61  ;;  %v318_v7 = vsub.s32 %v315_v1, %v641_v61  ;;  %vm369_vm9 = vcmask 654912   ;;  %vm376_vm10 = vcmask 720512   ;;  %s421_s24 = sshll.u32 %s539_s0, 4  ;;  %s422_s24 = int_to_ptr.vmem [resolvable:$true] %s421_s24 }
  0x11   :  { %v325_v12 = vsub.s32 %v322_v4, %v641_v61  ;;  %vm383_vm11 = vcmask 786112   ;;  %vm390_vm12 = vcmask 851712   ;;  %vm397_vm13 = vcmask 917312   ;;  %s514_s1 = scalar_lea.vmem %s422_s24, 16  ;;  %s518_s25 = scalar_lea.vmem %s422_s24, 32 }
  0x12   :  { %478 = vmatmul.mubr.msk.f32.gmra.mrb[2].mxu0 %vm44_vm0, %v24_v13  ;;  %vm404_vm14 = vcmask 982912   ;;  %vm411_vm15 = vcmask 1048512   ;;  %p515_p0 = scmp.ne.s32.totalorder %s422_s24, %s514_s1  ;;  %p519_p1 = scmp.lt.s32.totalorder %s422_s24, %s422_s24 }
  0x13   :  { %490 = vmatmul.mubr.msk.f32.gmra.mrb[2].mxu1 %vm44_vm0, %v32_v14  ;;  %480 = vmatprep.mubr.msk.f32.mxu0 %vm44_vm0, %v25_v15  ;;  %p520_p2 = scmp.lt.s32.totalorder %s518_s25, %s514_s1 }
  0x14   :  { %492 = vmatprep.mubr.msk.f32.mxu1 %vm44_vm0, %v33_v16  ;;  %v332_v16 = vsub.s32 %v329_v8, %v641_v61 }
  0x15   :  { %p521_p3 = por %p520_p2, %p519_p1 }
  0x16   :  { %481 = vmatmul.mubr.msk.f32.gmra.mrb[4].mxu0 %vm44_vm0, %v26_v17  ;;  %v350_v17 = vadd.s32 4294967240, %v303_v58 }
  0x17   :  { %493 = vmatmul.mubr.msk.f32.gmra.mrb[4].mxu1 %vm44_vm0, %v34_v18  ;;  %483 = vmatprep.mubr.msk.f32.mxu0 %vm44_vm0, %v27_v19  ;;  %v343_v18 = vadd.s32 4294967248, %v303_v58  ;;  %p522_p4 = pnand %p521_p3, %p515_p0 }
  0x18   :  { %495 = vmatprep.mubr.msk.f32.mxu1 %vm44_vm0, %v35_v20  ;;  %v339_v20 = vsub.s32 %v336_v10, %v641_v61 }
  0x1a   :  { %484 = vmatmul.mubr.msk.f32.gmra.mrb[6].mxu0 %vm44_vm0, %v28_v21  ;;  %v357_v21 = vadd.s32 4294967232, %v303_v58 }
  0x1b   :  { %496 = vmatmul.mubr.msk.f32.gmra.mrb[6].mxu1 %vm44_vm0, %v36_v22 }
  0xe1   :  { %v476_v25 = vpop.f32.mrb[0].mxu0 }
  0xe2   :  { %v488_v26 = vpop.f32.mrb[0].mxu1  ;;  %v165_v27 = vadd.f32 %v476_v25, %v429_v24  ;;  %v159_v29 = vpop.f32.mrb[1].mxu0  ;;  %v371_v25 = vadd.s32 4294967216, %v303_v58 }
  0xe3   :  { %v205_v28 = vadd.f32 %v488_v26, %v429_v24  ;;  %v199_v30 = vpop.f32.mrb[1].mxu1  ;;  %v160_v33 = vadd.f32 %v429_v24, %v159_v29  ;;  %v353_v29 = vsub.s32 %v350_v17, %v641_v61 }
  0xe4   :  { %258 = vperm.xlu0 %512, %v165_v27   ;;  %v200_v40 = vadd.f32 %v429_v24, %v199_v30  ;;  %v346_v30 = vsub.s32 %v343_v18, %v641_v61 }
  0xe5   :  { %282 = vperm.xlu1 %513, %v205_v28   ;;  %v479_v31 = vpop.f32.mrb[2].mxu0 }
  0xe6   :  { %v491_v32 = vpop.f32.mrb[2].mxu1  ;;  %v175_v34 = vadd.f32 %v479_v31, %v429_v24  ;;  %v169_v35 = vpop.f32.mrb[3].mxu0  ;;  %v378_v31 = vadd.s32 4294967208, %v303_v58 }
  0xe7   :  { %v209_v36 = vpop.f32.mrb[3].mxu1  ;;  %v215_v37 = vadd.f32 %v491_v32, %v429_v24  ;;  %v170_v45 = vadd.f32 %v429_v24, %v169_v35  ;;  %v360_v35 = vsub.s32 %v357_v21, %v641_v61 }
  0xe8   :  { %255 = vperm.xlu0 %512, %v160_v33   ;;  %v210_v46 = vadd.f32 %v429_v24, %v209_v36 }
  0xe9   :  { %264 = vperm.xlu1 %513, %v175_v34   ;;  %v482_v38 = vpop.f32.mrb[4].mxu0  ;;  %v392_v34 = vadd.s32 4294967192, %v303_v58 }
  0xea   :  { %v494_v39 = vpop.f32.mrb[4].mxu1  ;;  %v179_v41 = vpop.f32.mrb[5].mxu0  ;;  %v185_v49 = vadd.f32 %v482_v38, %v429_v24  ;;  %v367_v38 = vsub.s32 %v364_v23, %v641_v61 }
  0xeb   :  { %v219_v42 = vpop.f32.mrb[5].mxu1  ;;  %v180_v50 = vadd.f32 %v429_v24, %v179_v41  ;;  %v225_v53 = vadd.f32 %v494_v39, %v429_v24  ;;  %v374_v39 = vsub.s32 %v371_v25, %v641_v61 }
  0xec   :  { %279 = vperm.xlu0 %512, %v200_v40   ;;  %v220_v54 = vadd.f32 %v429_v24, %v219_v42 }
  0xed   :  { %288 = vperm.xlu1 %513, %v215_v37   ;;  %v485_v43 = vpop.f32.mrb[6].mxu0  ;;  %v385_v37 = vadd.s32 4294967200, %v303_v58 }
  0xee   :  { %v497_v44 = vpop.f32.mrb[6].mxu1  ;;  %v189_v47 = vpop.f32.mrb[7].mxu0  ;;  %v195_v51 = vadd.f32 %v485_v43, %v429_v24 }
  0xef   :  { %v229_v48 = vpop.f32.mrb[7].mxu1  ;;  %v190_v52 = vadd.f32 %v429_v24, %v189_v47  ;;  %v235_v55 = vadd.f32 %v497_v44, %v429_v24  ;;  %v406_v44 = vadd.s32 4294967176, %v303_v58 }
  0xf0   :  { %285 = vperm.xlu0 %512, %v210_v46   ;;  %v230_v56 = vadd.f32 %v429_v24, %v229_v48  ;;  %v381_v46 = vsub.s32 %v378_v31, %v641_v61  ;;  %v395_v48 = vsub.s32 %v392_v34, %v641_v61 }
  0xf1   :  { %261 = vperm.xlu1 %513, %v170_v45   ;;  %v399_v45 = vadd.s32 4294967184, %v303_v58  ;;  %v409_v58 = vsub.s32 %v406_v44, %v641_v61 }
  0xf4   :  { %267 = vperm.xlu0 %512, %v180_v50  }
  0xf5   :  { %270 = vperm.xlu1 %513, %v185_v49  }
  0xf8   :  { %273 = vperm.xlu0 %512, %v190_v52  }
  0xf9   :  { %276 = vperm.xlu1 %513, %v195_v51   ;;  %v388_v51 = vsub.s32 %v385_v37, %v641_v61 }
  0xfc   :  { %291 = vperm.xlu0 %512, %v220_v54  }
  0xfd   :  { %294 = vperm.xlu1 %513, %v225_v53  }
 0x100   :  { %297 = vperm.xlu0 %512, %v230_v56  }
 0x101   :  { %300 = vperm.xlu1 %513, %v235_v55  }
 0x163   :  { %v259_v60 = vpop.permute.xlu0 %258 }
 0x164   :  { %v639_v59 = vpop.permute.xlu1 %282  ;;  %v312_v11 = vrot.slane %v259_v60, %v311_v3  ;;  %v402_v60 = vsub.s32 %v399_v45, %v641_v61 }
 0x165   :  { %v368_v52 = vrot.slane %v639_v59, %v367_v38 }
 0x167   :  { %v256_v0 = vpop.permute.xlu0 %255 }
 0x168   :  { %v265_v63 = vpop.permute.xlu1 %264  ;;  %v307_v9 = vrot.slane %v256_v0, %v306_v2 }
 0x169   :  { %v326_v24 = vrot.slane %v265_v63, %v325_v12 }
 0x16a   :  { %v314_v19 = vsel %vm313_vm1, %v312_v11, %v307_v9 }
 0x16b   :  { %v280_v6 = vpop.permute.xlu0 %279 }
 0x16c   :  { %v645_v5 = vpop.permute.xlu1 %288  ;;  %v361_v49 = vrot.slane %v280_v6, %v360_v35 }
 0x16d   :  { %v382_v62 = vrot.slane %v645_v5, %v381_v46 }
 0x16f   :  { %v286_v14 = vpop.permute.xlu0 %285 }
 0x170   :  { %v262_v13 = vpop.permute.xlu1 %261  ;;  %v375_v56 = vrot.slane %v286_v14, %v374_v39 }
 0x171   :  { %v319_v15 = vrot.slane %v262_v13, %v318_v7 }
 0x173   :  { %v321_v22 = vsel %vm320_vm2, %v319_v15, %v314_v19  ;;  %v268_v27 = vpop.permute.xlu0 %267 }
 0x174   :  { %v271_v26 = vpop.permute.xlu1 %270  ;;  %v333_v28 = vrot.slane %v268_v27, %v332_v16  ;;  %v328_v33 = vsel %vm327_vm3, %v326_v24, %v321_v22 }
 0x175   :  { %v340_v32 = vrot.slane %v271_v26, %v339_v20 }
 0x176   :  { %v335_v36 = vsel %vm334_vm4, %v333_v28, %v328_v33 }
 0x177   :  { %v274_v41 = vpop.permute.xlu0 %273  ;;  %v342_v47 = vsel %vm341_vm5, %v340_v32, %v335_v36 }
 0x178   :  { %v277_v40 = vpop.permute.xlu1 %276  ;;  %v347_v43 = vrot.slane %v274_v41, %v346_v30 }
 0x179   :  { %v354_v42 = vrot.slane %v277_v40, %v353_v29 }
 0x17a   :  { %v349_v50 = vsel %vm348_vm6, %v347_v43, %v342_v47 }
 0x17b   :  { %v356_v53 = vsel %vm355_vm7, %v354_v42, %v349_v50  ;;  %v292_v55 = vpop.permute.xlu0 %291 }
 0x17c   :  { %v295_v54 = vpop.permute.xlu1 %294  ;;  %v363_v57 = vsel %vm362_vm8, %v361_v49, %v356_v53  ;;  %v389_v1 = vrot.slane %v292_v55, %v388_v51 }
 0x17d   :  { %v370_v63 = vsel %vm369_vm9, %v368_v52, %v363_v57  ;;  %v396_v2 = vrot.slane %v295_v54, %v395_v48 }
 0x17e   :  { %v377_v0 = vsel %vm376_vm10, %v375_v56, %v370_v63 }
 0x17f   :  { %v384_v59 = vsel %vm383_vm11, %v382_v62, %v377_v0  ;;  %v298_v4 = vpop.permute.xlu0 %297 }
 0x180   :  { %v301_v3 = vpop.permute.xlu1 %300  ;;  %v391_v6 = vsel %vm390_vm12, %v389_v1, %v384_v59  ;;  %v403_v8 = vrot.slane %v298_v4, %v402_v60 }
 0x181   :  { %v410_v7 = vrot.slane %v301_v3, %v409_v58  ;;  %v398_v9 = vsel %vm397_vm13, %v396_v2, %v391_v6 }
 0x182   :  { %v405_v61 = vsel %vm404_vm14, %v403_v8, %v398_v9 }
 0x183   :  { %v412_v5 = vsel %vm411_vm15, %v410_v7, %v405_v61 }
 0x184   :  { %414 = vst [vmem:[#allocation3] sm:$0x1] %v412_v5 }
 0x185   :  { %525 = shalt.err (!%p522_p4)
}
 0x186   :  { %s526_s28 = scalar_lea.hbm %s678_s3, 16 }
 0x187   :  { %p527_p5 = scmp.ne.s32.totalorder %s678_s3, %s526_s28  ;;  %p530_p6 = scmp.lt.u32.totalorder %s526_s28, %s678_s3 }
 0x189   :  { %p532_p7 = pnand %p530_p6, %p527_p5 }
 0x18b   :  { %535 = shalt.err (!%p532_p7)
}
 0x18c   :  { %424 = dma.vmem_to_hbm [thread:$0]  %s422_s24, 16, %s678_s3, [#allocation4]  }
 0x18d   :  { %536 = dma.done.wait [#allocation4], 16  }
 0x18e   :  { %537 = vsyncadd [#allocation4], 4294967280 }
 0x18f   :  { %428 = vsyncpa [#allocation4], 1 }

</bundles_post_ra>
